<compile_context>
chip_gen: v5e
topology: v5e:2x2
jax: 0.10.0
libtpu: 0.0.40
codegen_flags: <defaults>
</compile_context>

<pallas_src>
import jax
import jax.numpy as jnp
from jax.experimental import pallas as pl
from jax.experimental.pallas import tpu as pltpu


# ---------------------------------------------------------------------------
# Preferred path: zero data movement.
# ---------------------------------------------------------------------------
def _passthrough_kernel(c_ref, n_ref, u_ref, oc_ref, on_ref, ou_ref):
    # forward() is an identity on the parameters.  The outputs alias the
    # inputs (same HBM buffers), so there is nothing to do in the body.
    del c_ref, n_ref, u_ref, oc_ref, on_ref, ou_ref


def _forward_passthrough(c_emb, n_emb, u_emb):
    sd = lambda a: jax.ShapeDtypeStruct(a.shape, a.dtype)
    any_spec = pl.BlockSpec(memory_space=pl.ANY)
    return pl.pallas_call(
        _passthrough_kernel,
        out_shape=(sd(c_emb), sd(n_emb), sd(u_emb)),
        in_specs=[any_spec, any_spec, any_spec],
        out_specs=(any_spec, any_spec, any_spec),
        # Required for correctness here: outputs are the (unwritten) input
        # buffers.  Free when params are donated; one protective XLA copy
        # per table otherwise (the minimum possible traffic).
        input_output_aliases={0: 0, 1: 1, 2: 2},
    )(c_emb, n_emb, u_emb)


# ---------------------------------------------------------------------------
# Fallback path: explicit tiled copy (only used if the zero-copy pass-through
# fails to lower on the local toolchain).
# ---------------------------------------------------------------------------
def _copy_kernel(c_ref, n_ref, u_ref, oc_ref, on_ref, ou_ref):
    oc_ref[...] = c_ref[...]
    on_ref[...] = n_ref[...]
    ou_ref[...] = u_ref[...]


def _sublane_pack(dtype):
    # Native sublane pack per dtype width: f32->8, bf16->16, int8/fp8->32.
    return {4: 8, 2: 16, 1: 32}.get(jnp.dtype(dtype).itemsize, 8)


def _pick_tile_rows(n_rows, row_bytes, pack, *, tile_budget_bytes=2 << 20,
                    target_rows=512, min_steps=4):
    """Row-tile that is pack-aligned, <= ~2 MiB, and (when possible) yields at
    least `min_steps` grid steps so both v7x TensorCores stay busy."""
    if n_rows <= pack:
        return n_rows
    cap = max(pack, tile_budget_bytes // max(row_bytes, 1))
    quarter = max(pack, (pl.cdiv(n_rows, min_steps) // pack) * pack)
    tm = min(n_rows, target_rows, cap, quarter)
    tm = max(pack, (tm // pack) * pack)
    return tm


def _forward_copy(c_emb, n_emb, u_emb, *, donate_params=False):
    code_num, code_size = c_emb.shape
    dtype = c_emb.dtype
    total = code_num * code_size

    # Lane-dense working shape: a sub-128 last dim would force masked partial
    # stores; fold the contiguous row-major table into 128-wide rows when
    # possible (metadata-only reshape in the wrapper).
    if code_size % 128 == 0:
        work_shape = (code_num, code_size)
    elif total % 128 == 0:
        work_shape = (total // 128, 128)
    else:
        work_shape = (code_num, code_size)  # block spans full feature dim

    n_rows, width = work_shape
    pack = _sublane_pack(dtype)
    row_bytes = width * jnp.dtype(dtype).itemsize
    tm = _pick_tile_rows(n_rows, row_bytes, pack)
    grid = (pl.cdiv(n_rows, tm),)  # last block masked if n_rows % tm != 0

    spec = pl.BlockSpec((tm, width), lambda i: (i, 0))
    out_sd = jax.ShapeDtypeStruct(work_shape, dtype)
    ins = tuple(x.reshape(work_shape) for x in (c_emb, n_emb, u_emb))

    outs = pl.pallas_call(
        _copy_kernel,
        out_shape=(out_sd, out_sd, out_sd),
        grid_spec=pltpu.PrefetchScalarGridSpec(
            num_scalar_prefetch=0,
            grid=grid,
            in_specs=[spec, spec, spec],
            out_specs=[spec, spec, spec],
        ),
        # Alias only if the caller donates the buffers; otherwise aliasing
        # would add protective copies on top of the kernel's own copy.
        input_output_aliases=({0: 0, 1: 1, 2: 2} if donate_params else {}),
        compiler_params=pltpu.CompilerParams(
            dimension_semantics=("parallel",),
            vmem_limit_bytes=48 << 20,  # fits v5e/v6e/v7x; covers 12x2MiB tiles
        ),
    )(*ins)
    return tuple(o.reshape(code_num, code_size) for o in outs)


# ---------------------------------------------------------------------------
# Public wrapper: Pallas equivalent of EmbeddingLayer.forward().
# ---------------------------------------------------------------------------
def embedding_layer_forward(c_emb, n_emb, u_emb, *, donate_params=False):
    """Returns (c_embeddings, n_embeddings, u_embeddings)."""
    assert c_emb.shape == n_emb.shape == u_emb.shape
    assert c_emb.dtype == n_emb.dtype == u_emb.dtype
    try:
        outs = _forward_passthrough(c_emb, n_emb, u_emb)
        jax.block_until_ready(outs)
        return outs
    except Exception:
        # Conservative fallback: tiled, double-buffered identity copy.
        return _forward_copy(c_emb, n_emb, u_emb, donate_params=donate_params)


def init_embedding_layer_params(key, code_num, code_size, dtype=jnp.float32):
    """Deterministic xavier_uniform_ init matching nn.init.xavier_uniform_."""
    bound = (6.0 / (code_num + code_size)) ** 0.5
    kc, kn, ku = jax.random.split(key, 3)
    shape = (code_num, code_size)
    c = jax.random.uniform(kc, shape, dtype, -bound, bound)
    n = jax.random.uniform(kn, shape, dtype, -bound, bound)
    u = jax.random.uniform(ku, shape, dtype, -bound, bound)
    return c, n, u


if __name__ == "__main__":
    # Small synthetic shapes consistent with the module's __init__.
    # code_size is lane-dense (multiple of 128); graph_size is unused in
    # forward().  TODO(synk): graph_size/device args have no forward-pass role.
    code_num, code_size, graph_size = 1024, 128, 8

    key = jax.random.PRNGKey(0)
    params = init_embedding_layer_params(key, code_num, code_size)
    # Recompute expected values independently (same key => same values) so the
    # check never depends on the possibly-aliased input buffers.
    expected = init_embedding_layer_params(key, code_num, code_size)

    outs = embedding_layer_forward(*params)
    jax.block_until_ready(outs)

    for o, e in zip(outs, expected):
        assert o.shape == (code_num, code_size) and o.dtype == e.dtype
        assert bool(jnp.all(o == e))

    print("KERNEL_OK")
</pallas_src>

<mosaic_0001>
module attributes {stable_mosaic.version = 11 : i64} {
  func.func @_passthrough_kernel(%arg0: memref<1024x128xf32, #tpu.memory_space<any>>, %arg1: memref<1024x128xf32, #tpu.memory_space<any>>, %arg2: memref<1024x128xf32, #tpu.memory_space<any>>, %arg3: memref<1024x128xf32, #tpu.memory_space<any>>, %arg4: memref<1024x128xf32, #tpu.memory_space<any>>, %arg5: memref<1024x128xf32, #tpu.memory_space<any>>) attributes {dimension_semantics = [], scalar_prefetch = 0 : i64, scratch_operands = 0 : i64, tpu.core_type = #tpu.core_type<tc>} {
    return
  }
}

module attributes {stable_mosaic.version = 11 : i64} {
  func.func @_copy_kernel(%arg0: i32, %arg1: memref<256x128xf32, #tpu.memory_space<vmem>>, %arg2: memref<256x128xf32, #tpu.memory_space<vmem>>, %arg3: memref<256x128xf32, #tpu.memory_space<vmem>>, %arg4: memref<256x128xf32, #tpu.memory_space<vmem>>, %arg5: memref<256x128xf32, #tpu.memory_space<vmem>>, %arg6: memref<256x128xf32, #tpu.memory_space<vmem>>) attributes {dimension_semantics = [#tpu.dimension_semantics<parallel>], iteration_bounds = array<i64: 4>, scalar_prefetch = 0 : i64, scratch_operands = 0 : i64, tpu.core_type = #tpu.core_type<tc>, window_params = [{transform_indices = @transform_0, window_bounds = array<i64: 256, 128>}, {transform_indices = @transform_1, window_bounds = array<i64: 256, 128>}, {transform_indices = @transform_2, window_bounds = array<i64: 256, 128>}, {transform_indices = @transform_3, window_bounds = array<i64: 256, 128>}, {transform_indices = @transform_4, window_bounds = array<i64: 256, 128>}, {transform_indices = @transform_5, window_bounds = array<i64: 256, 128>}]} {
    %c0 = arith.constant 0 : index
    %c0_0 = arith.constant 0 : index
    %0 = vector.load %arg1[%c0, %c0_0] : memref<256x128xf32, #tpu.memory_space<vmem>>, vector<256x128xf32>
    %c0_1 = arith.constant 0 : index
    %c0_2 = arith.constant 0 : index
    %1 = vector.load %arg4[%c0_1, %c0_2] : memref<256x128xf32, #tpu.memory_space<vmem>>, vector<256x128xf32>
    tpu.vector_store %arg4[%c0_1, %c0_2], %0 {strides = array<i32>} : memref<256x128xf32, #tpu.memory_space<vmem>>, vector<256x128xf32>,
    %c0_3 = arith.constant 0 : index
    %c0_4 = arith.constant 0 : index
    %2 = vector.load %arg2[%c0_3, %c0_4] : memref<256x128xf32, #tpu.memory_space<vmem>>, vector<256x128xf32>
    %c0_5 = arith.constant 0 : index
    %c0_6 = arith.constant 0 : index
    %3 = vector.load %arg5[%c0_5, %c0_6] : memref<256x128xf32, #tpu.memory_space<vmem>>, vector<256x128xf32>
    tpu.vector_store %arg5[%c0_5, %c0_6], %2 {strides = array<i32>} : memref<256x128xf32, #tpu.memory_space<vmem>>, vector<256x128xf32>,
    %c0_7 = arith.constant 0 : index
    %c0_8 = arith.constant 0 : index
    %4 = vector.load %arg3[%c0_7, %c0_8] : memref<256x128xf32, #tpu.memory_space<vmem>>, vector<256x128xf32>
    %c0_9 = arith.constant 0 : index
    %c0_10 = arith.constant 0 : index
    %5 = vector.load %arg6[%c0_9, %c0_10] : memref<256x128xf32, #tpu.memory_space<vmem>>, vector<256x128xf32>
    tpu.vector_store %arg6[%c0_9, %c0_10], %4 {strides = array<i32>} : memref<256x128xf32, #tpu.memory_space<vmem>>, vector<256x128xf32>,
    return
  }
  func.func @transform_0(%arg0: i32) -> (i32, i32) {
    %c0_i32 = arith.constant 0 : i32
    %c0_i32_0 = arith.constant 0 : i32
    return %arg0, %c0_i32 : i32, i32
  }
  func.func @transform_1(%arg0: i32) -> (i32, i32) {
    %c0_i32 = arith.constant 0 : i32
    %c0_i32_0 = arith.constant 0 : i32
    return %arg0, %c0_i32 : i32, i32
  }
  func.func @transform_2(%arg0: i32) -> (i32, i32) {
    %c0_i32 = arith.constant 0 : i32
    %c0_i32_0 = arith.constant 0 : i32
    return %arg0, %c0_i32 : i32, i32
  }
  func.func @transform_3(%arg0: i32) -> (i32, i32) {
    %c0_i32 = arith.constant 0 : i32
    %c0_i32_0 = arith.constant 0 : i32
    return %arg0, %c0_i32 : i32, i32
  }
  func.func @transform_4(%arg0: i32) -> (i32, i32) {
    %c0_i32 = arith.constant 0 : i32
    %c0_i32_0 = arith.constant 0 : i32
    return %arg0, %c0_i32 : i32, i32
  }
  func.func @transform_5(%arg0: i32) -> (i32, i32) {
    %c0_i32 = arith.constant 0 : i32
    %c0_i32_0 = arith.constant 0 : i32
    return %arg0, %c0_i32 : i32, i32
  }
}

</mosaic_0001>

<bundles_post_ra>
// kernel: tpu_custom_call.1
= control target key start
LH: loop header
LB: loop body
LE: loop exit
PB: predicated region body
PF: predicated region fallthrough
CT: control target
= control target key end

     0   :  { %s41_s0 = inlined_call_operand.hbm [shape: f32[1024,128], index: 0, kind: input, shape index: {}, may-alias: {0,3}]   ;;  %s42_s1 = inlined_call_operand.hbm [shape: f32[1024,128], index: 1, kind: input, shape index: {}, may-alias: {1,4}]   ;;  %s43_s2 = inlined_call_operand.hbm [shape: f32[1024,128], index: 2, kind: input, shape index: {}, may-alias: {2,5}]   ;;  %s44_s3 = inlined_call_operand.hbm [shape: f32[1024,128], index: 3, kind: output, shape index: {0}, may-alias: {0,3}]   ;;  %s45_s4 = inlined_call_operand.hbm [shape: f32[1024,128], index: 4, kind: output, shape index: {1}, may-alias: {1,4}]   ;;  %s46_s5 = inlined_call_operand.hbm [shape: f32[1024,128], index: 5, kind: output, shape index: {2}, may-alias: {2,5}]  }

// kernel: tpu_custom_call.1
= control target key start
LH: loop header
LB: loop body
LE: loop exit
PB: predicated region body
PF: predicated region fallthrough
CT: control target
= control target key end

     0   :  { %s1618_s0 = inlined_call_operand.hbm [shape: f32[1024,128], index: 0, kind: input, shape index: {}]   ;;  %s1619_s1 = inlined_call_operand.hbm [shape: f32[1024,128], index: 1, kind: input, shape index: {}]   ;;  %s1620_s2 = inlined_call_operand.hbm [shape: f32[1024,128], index: 2, kind: input, shape index: {}]   ;;  %s1621_s3 = inlined_call_operand.hbm [shape: f32[1024,128], index: 3, kind: output, shape index: {0}]   ;;  %s1622_s4 = inlined_call_operand.hbm [shape: f32[1024,128], index: 4, kind: output, shape index: {1}]   ;;  %s1623_s5 = inlined_call_operand.hbm [shape: f32[1024,128], index: 5, kind: output, shape index: {2}]  }
   0x1   :  { %1631 = sst [smem:[#allocation19_spill]] %s1618_s0 }
   0x2   :  { %1632 = sst [smem:[#allocation20_spill]] %s1619_s1 }
   0x3   :  { %11 = vsyncpa [#allocation3], 0 }
   0x4   :  { %13 = vsyncpa [#allocation3 + $0x1], 0 }
   0x5   :  { %14 = vsyncpa [#allocation6], 0 }
   0x6   :  { %16 = vsyncpa [#allocation6 + $0x1], 0 }
   0x7   :  { %17 = vsyncpa [#allocation4], 0 }
   0x8   :  { %19 = vsyncpa [#allocation4 + $0x1], 0 }
   0x9   :  { %20 = vsyncpa [#allocation10], 0 }
   0xa   :  { %22 = vsyncpa [#allocation10 + $0x1], 0  ;;  %s1143_s18 = smov 0   ;;  %s1145_s19 = smov 0  }
   0xb   :  { %s1147_s20 = smov 0   ;;  %s1149_s21 = smov 0  }
   0xc LB: > { %1633 = sst [smem:[#allocation16_spill]] %s1103_s20  ;;  %s1164_s22 = sadd.s32 4294967295, %s1107_s21   ;;  %s1107_s21 = sphi %s1149_s21, %s1646_s21   ;;  %s1103_s20 = sphi %s1147_s20, %s1648_s20   ;;  %s1099_s19 = sphi %s1145_s19, %s1650_s19   ;;  %s1095_s18 = sphi %s1143_s18, %s1649_s18  }
   0xd   : > { %s1624_s23 = sadd.s32 4294967294, %s1107_s21   ;;  %s1168_s24 = sadd.s32 1, %s1107_s21  }
   0xe   : > { %1634 = sst [smem:[#allocation17_spill]] %s1168_s24  ;;  %s35_s25 = sadd.s32 1, %s1103_s20 }
   0xf   : > { %s32_s26 = ssub.s32 %s1107_s21, %s1168_s24  ;;  %p42_p0 = scmp.ne.s32.totalorder %s1103_s20, %s1099_s19 }
  0x10   : > { %p33_p1 = scmp.eq.s32.totalorder %s32_s26, 0  ;;  %p43_p2 = scmp.eq.s32.totalorder %s1107_s21, 0 }
  0x11   : > { %p48_p3 = scmp.ne.s32.totalorder %s1099_s19, %s1095_s18  ;;  %p49_p4 = scmp.eq.s32.totalorder %s1164_s22, 0 }
  0x12   : > { %s1180_s27 = scalar_select %p33_p1, %s1103_s20, %s35_s25  }
  0x13   : > { %p44_p5 = por %p43_p2, %p42_p0  ;;  %p1182_p6 = por %p49_p4, %p48_p3 }
  0x14   : > { %1635 = sst [smem:[#allocation18_spill]] %s1180_s27  ;;  %p124_p7 = scmp.eq.s32.totalorder %s1164_s22, 3 }
  0x15   : > { %p130_p8 = scmp.eq.s32.totalorder %s1624_s23, 3  ;;  %p849_p9 = scmp.lt.s32.totalorder %s1107_s21, 4 }
  0x16   : > { %p1190_p10 = por %p124_p7, %p42_p0  ;;  %s1625_s6 = sand.u32 1, %s1103_s20  }
  0x17   : > { %p1194_p11 = por %p130_p8, %p48_p3  ;;  %s1200_s7 = sshll.u32 %s1107_s21, 8 }
  0x18   : > { %s1204_s8 = sshll.u32 %s1625_s6, 8  ;;  %p1206_p12 = pnand %p849_p9, %p44_p5 }
  0x19   : > { %s224_s10 = sand.u32 1, %s1107_s21   ;;  %s1640_s1 = sld [smem:[#allocation20_spill]] }
  0x1a   : > { %s228_s14 = scalar_lea.vmem [#allocation5], %s1204_s8  ;;  %p793_p13 = scmp.ge.s32.totalorder %s1107_s21, 1 }
  0x1b   : > { %s236_s15 = sshll.u32 %s228_s14, 4  ;;  %s1217_s17 = scalar_lea.sflag [#allocation6], %s224_s10  ;;  %s237_s15 = int_to_ptr.vmem [resolvable:$true] %s236_s15 }
  0x1c   : > { %p891_p1 = pneg %p1206_p12 }
  0x1f   : > { %s233_s13 = scalar_lea.hbm %s1640_s1, %s1200_s7  ;;  %s894_s14 = scalar_lea.hbm %s1640_s1, 1024 }
  0x20   : > { %s234_s16 = sshll.u32 %s233_s13, 4  ;;  %s235_s16 = int_to_ptr.hbm [resolvable:$true] %s234_s16 }
  0x21   : > { %s887_s25 = sshra.s32 %s235_s16, 4  ;;  %s888_s25 = int_to_ptr.hbm [resolvable:$true] %s887_s25 }
  0x22   : > { %s889_s26 = scalar_lea.hbm %s888_s25, 256  ;;  %p895_p4 = scmp.lt.s32.totalorder %s888_s25, %s1640_s1 }
  0x23   : > { %p890_p0 = scmp.ne.s32.totalorder %s888_s25, %s889_s26  ;;  %p896_p5 = scmp.lt.s32.totalorder %s894_s14, %s889_s26 }
  0x25   : > { %p892_p2 = pnand %p891_p1, %p890_p0  ;;  %p897_p7 = por %p896_p5, %p895_p4 }
  0x27   : > { %p893_p3 = pneg %p892_p2 }
  0x29   : > { %p898_p8 = pnand %p897_p7, %p893_p3 }
  0x2b   : > { %901 = shalt.err (!%p898_p8)
}
  0x2c   : > { %s1628_s10 = smov 128   ;;  %s1110_s6 = smov 8  }
  0x2d   : > { %835 = dma.hbm_to_vmem [thread:$0]  (!%p1206_p12), %s235_s16, 4096, %s237_s15, %s1217_s17, %s1628_s10, %s1628_s10, %s1110_s6  }
  0x2e   : > { %p266_p9 = scmp.lt.s32.totalorder %s1107_s21, 5  ;;  %s1641_s0 = sld [smem:[#allocation19_spill]] }
  0x2f   : > { %s206_s14 = scalar_lea.vmem [#allocation2], %s1204_s8  ;;  %s1643_s1 = sand.u32 1, %s1103_s20  }
  0x30   : > { %p1243_p0 = pnand %p793_p13, %p266_p9  ;;  %s214_s13 = sshll.u32 %s206_s14, 4  ;;  %s215_s13 = int_to_ptr.vmem [resolvable:$true] %s214_s13 }
  0x31   : > { %s203_s27 = scalar_lea.sflag [#allocation3], %s1643_s1 }
  0x34   : > { %s211_s26 = scalar_lea.hbm %s1641_s0, %s1200_s7  ;;  %s924_s25 = scalar_lea.hbm %s1641_s0, 1024 }
  0x35   : > { %s212_s12 = sshll.u32 %s211_s26, 4  ;;  %s213_s12 = int_to_ptr.hbm [resolvable:$true] %s212_s12 }
  0x36   : > { %s917_s24 = sshra.s32 %s213_s12, 4  ;;  %s918_s24 = int_to_ptr.hbm [resolvable:$true] %s917_s24 }
  0x37   : > { %s919_s15 = scalar_lea.hbm %s918_s24, 256  ;;  %p925_p13 = scmp.lt.s32.totalorder %s918_s24, %s1641_s0 }
  0x38   : > { %p920_p2 = scmp.ne.s32.totalorder %s918_s24, %s919_s15  ;;  %p926_p5 = scmp.lt.s32.totalorder %s924_s25, %s919_s15 }
  0x3a   : > { %p922_p3 = pnand %p920_p2, %p891_p1  ;;  %p927_p7 = por %p926_p5, %p925_p13 }
  0x3c   : > { %p923_p4 = pneg %p922_p3 }
  0x3e   : > { %p928_p8 = pnand %p927_p7, %p923_p4 }
  0x40   : > { %931 = shalt.err (!%p928_p8)
}
  0x41   : > { %s1644_s1 = smov 128   ;;  %s255_s23 = scalar_lea.hbm %s1620_s2, %s1200_s7 }
  0x42   : > { %832 = dma.hbm_to_vmem [thread:$0]  (!%p1206_p12), %s213_s12, 4096, %s215_s13, %s203_s27, %s1644_s1, %s1644_s1, %s1110_s6  }
  0x43   : > { %s250_s20 = scalar_lea.vmem [#allocation7], %s1204_s8  ;;  %s256_s24 = sshll.u32 %s255_s23, 4  ;;  %s257_s24 = int_to_ptr.hbm [resolvable:$true] %s256_s24 }
  0x44   : > { %s258_s10 = sshll.u32 %s250_s20, 4  ;;  %s947_s15 = sshra.s32 %s257_s24, 4  ;;  %s259_s10 = int_to_ptr.vmem [resolvable:$true] %s258_s10  ;;  %s948_s15 = int_to_ptr.hbm [resolvable:$true] %s947_s15 }
  0x45   : > { %s949_s25 = scalar_lea.hbm %s948_s15, 256  ;;  %s954_s27 = scalar_lea.hbm %s1620_s2, 1024 }
  0x46   : > { %p950_p9 = scmp.ne.s32.totalorder %s948_s15, %s949_s25  ;;  %p955_p4 = scmp.lt.s32.totalorder %s948_s15, %s1620_s2 }
  0x47   : > { %p956_p13 = scmp.lt.s32.totalorder %s954_s27, %s949_s25 }
  0x48   : > { %p952_p2 = pnand %p950_p9, %p891_p1 }
  0x49   : > { %p957_p5 = por %p956_p13, %p955_p4 }
  0x4a   : > { %p953_p3 = pneg %p952_p2 }
  0x4c   : > { %p958_p7 = pnand %p957_p5, %p953_p3 }
  0x4e   : > { %961 = shalt.err (!%p958_p7)
}
  0x4f   : > { %838 = dma.hbm_to_vmem [thread:$0]  (!%p1206_p12), %s257_s24, 4096, %s259_s10, %s1217_s17, %s1644_s1, %s1644_s1, %s1110_s6  }
  0x50   : > { %270 = sbr.rel (%p1243_p0) target bundleno = 213 (0xd5), region = 32  ;;  %s1287_s0 = sand.u32 (!%p1243_p0), 1, %s1099_s19  }
  0x51   : > { %s1290_s20 = sshll.u32 (!%p1243_p0), %s1287_s0, 8  ;;  %s273_s7 = scalar_lea.sflag (!%p1243_p0), [#allocation3], %s1287_s0 }
  0x52   : > { %s1294_s8 = scalar_lea.vmem (!%p1243_p0), [#allocation2], %s1290_s20 }
  0x55   : > { %1078 = dma.done.wait (%p1182_p6), %s273_s7, 4096  }
  0x56   : > { %1080 = vsyncadd (%p1182_p6), %s273_s7, 4294963200  ;;  %s282_s6 = sand.u32 1, %s1164_s22   ;;  %s1304_s17 = scalar_lea.vmem [#allocation5], %s1290_s20 }
  0x57   : > { %s283_s9 = scalar_lea.sflag [#allocation6], %s282_s6 }
  0x58   : > { %1082 = dma.done.wait (%p1182_p6), %s283_s9, 8192  }
  0x59   : > { %1084 = vsyncadd (%p1182_p6), %s283_s9, 4294959104  ;;  %v414_v0 = vld [vmem:[%s1304_s17] sm:$0xff]  ;;  %v415_v1 = vld [vmem:[%s1304_s17 + $0x8] sm:$0xff]  ;;  %s1314_s11 = scalar_lea.vmem [#allocation9], %s1290_s20  ;;  %s1381_s28 = scalar_lea.vmem [#allocation8], %s1290_s20 }
  0x5a   : > { %v416_v2 = vld [vmem:[%s1304_s17 + $0x10] sm:$0xff]  ;;  %446 = vst [vmem:[%s1314_s11] sm:$0xff] %v414_v0  ;;  %v417_v3 = vld [vmem:[%s1304_s17 + $0x18] sm:$0xff]  ;;  %v418_v4 = vld [vmem:[%s1304_s17 + $0x20] sm:$0xff]  ;;  %s1443_s1 = scalar_lea.vmem [#allocation7], %s1290_s20  ;;  %s1451_s14 = scalar_lea.vmem [#allocation11], %s1290_s20 }
  0x5b   : > { %447 = vst [vmem:[%s1314_s11 + $0x8] sm:$0xff] %v415_v1  ;;  %v419_v5 = vld [vmem:[%s1304_s17 + $0x28] sm:$0xff]  ;;  %v420_v6 = vld [vmem:[%s1304_s17 + $0x30] sm:$0xff]  ;;  %v421_v7 = vld [vmem:[%s1304_s17 + $0x38] sm:$0xff]  ;;  %s814_s16 = sshll.u32 %s1164_s22, 8  ;;  %s582_s15 = sshll.u32 %s1314_s11, 4  ;;  %s1518_s15 = int_to_ptr.vmem [resolvable:$true] %s582_s15 }
  0x5c   : > { %448 = vst [vmem:[%s1314_s11 + $0x10] sm:$0xff] %v416_v2  ;;  %v422_v8 = vld [vmem:[%s1304_s17 + $0x40] sm:$0xff]  ;;  %v423_v9 = vld [vmem:[%s1304_s17 + $0x48] sm:$0xff]  ;;  %v424_v10 = vld [vmem:[%s1304_s17 + $0x50] sm:$0xff]  ;;  %s581_s24 = scalar_lea.hbm %s1622_s4, %s814_s16  ;;  %s564_s27 = scalar_lea.hbm %s1621_s3, %s814_s16 }
  0x5d   : > { %449 = vst [vmem:[%s1314_s11 + $0x18] sm:$0xff] %v417_v3  ;;  %v425_v11 = vld [vmem:[%s1304_s17 + $0x58] sm:$0xff]  ;;  %v426_v12 = vld [vmem:[%s1304_s17 + $0x60] sm:$0xff]  ;;  %v427_v13 = vld [vmem:[%s1304_s17 + $0x68] sm:$0xff]  ;;  %s598_s20 = scalar_lea.hbm %s1623_s5, %s814_s16  ;;  %s1520_s7 = sshll.u32 %s581_s24, 4  ;;  %s585_s7 = int_to_ptr.hbm [resolvable:$true] %s1520_s7 }
  0x5e   : > { %450 = vst [vmem:[%s1314_s11 + $0x20] sm:$0xff] %v418_v4  ;;  %v428_v14 = vld [vmem:[%s1304_s17 + $0x70] sm:$0xff]  ;;  %v429_v15 = vld [vmem:[%s1304_s17 + $0x78] sm:$0xff]  ;;  %v430_v16 = vld [vmem:[%s1304_s17 + $0x80] sm:$0xff]  ;;  %s1525_s9 = sshll.u32 %s564_s27, 4  ;;  %s991_s16 = sshra.s32 %s585_s7, 4  ;;  %s568_s9 = int_to_ptr.hbm [resolvable:$true] %s1525_s9  ;;  %s992_s16 = int_to_ptr.hbm [resolvable:$true] %s991_s16 }
  0x5f   : > { %451 = vst [vmem:[%s1314_s11 + $0x28] sm:$0xff] %v419_v5  ;;  %v431_v17 = vld [vmem:[%s1304_s17 + $0x88] sm:$0xff]  ;;  %v432_v18 = vld [vmem:[%s1304_s17 + $0x90] sm:$0xff]  ;;  %v433_v19 = vld [vmem:[%s1304_s17 + $0x98] sm:$0xff]  ;;  %s997_s24 = scalar_lea.hbm %s1622_s4, 1024  ;;  %p998_p0 = scmp.lt.s32.totalorder %s992_s16, %s1622_s4 }
  0x60   : > { %452 = vst [vmem:[%s1314_s11 + $0x30] sm:$0xff] %v420_v6  ;;  %v434_v20 = vld [vmem:[%s1304_s17 + $0xa0] sm:$0xff]  ;;  %v435_v21 = vld [vmem:[%s1304_s17 + $0xa8] sm:$0xff]  ;;  %v436_v22 = vld [vmem:[%s1304_s17 + $0xb0] sm:$0xff] }
  0x61   : > { %453 = vst [vmem:[%s1314_s11 + $0x38] sm:$0xff] %v421_v7  ;;  %v437_v23 = vld [vmem:[%s1304_s17 + $0xb8] sm:$0xff]  ;;  %v438_v24 = vld [vmem:[%s1304_s17 + $0xc0] sm:$0xff]  ;;  %v439_v25 = vld [vmem:[%s1304_s17 + $0xc8] sm:$0xff] }
  0x62   : > { %454 = vst [vmem:[%s1314_s11 + $0x40] sm:$0xff] %v422_v8  ;;  %v440_v26 = vld [vmem:[%s1304_s17 + $0xd0] sm:$0xff]  ;;  %v441_v27 = vld [vmem:[%s1304_s17 + $0xd8] sm:$0xff]  ;;  %v442_v28 = vld [vmem:[%s1304_s17 + $0xe0] sm:$0xff] }
  0x63   : > { %455 = vst [vmem:[%s1314_s11 + $0x48] sm:$0xff] %v423_v9  ;;  %v443_v29 = vld [vmem:[%s1304_s17 + $0xe8] sm:$0xff]  ;;  %v444_v30 = vld [vmem:[%s1304_s17 + $0xf0] sm:$0xff]  ;;  %v445_v31 = vld [vmem:[%s1304_s17 + $0xf8] sm:$0xff]  ;;  %s1529_s17 = sshll.u32 %s598_s20, 4  ;;  %s602_s17 = int_to_ptr.hbm [resolvable:$true] %s1529_s17 }
  0x64   : > { %456 = vst [vmem:[%s1314_s11 + $0x50] sm:$0xff] %v424_v10  ;;  %v350_v32 = vld [vmem:[%s1294_s8] sm:$0xff]  ;;  %v351_v33 = vld [vmem:[%s1294_s8 + $0x8] sm:$0xff]  ;;  %v352_v34 = vld [vmem:[%s1294_s8 + $0x10] sm:$0xff] }
  0x65   : > { %457 = vst [vmem:[%s1314_s11 + $0x58] sm:$0xff] %v425_v11  ;;  %v353_v35 = vld [vmem:[%s1294_s8 + $0x18] sm:$0xff]  ;;  %v354_v36 = vld [vmem:[%s1294_s8 + $0x20] sm:$0xff]  ;;  %v355_v37 = vld [vmem:[%s1294_s8 + $0x28] sm:$0xff] }
  0x66   : > { %458 = vst [vmem:[%s1314_s11 + $0x60] sm:$0xff] %v426_v12  ;;  %v356_v38 = vld [vmem:[%s1294_s8 + $0x30] sm:$0xff]  ;;  %v357_v39 = vld [vmem:[%s1294_s8 + $0x38] sm:$0xff]  ;;  %v358_v40 = vld [vmem:[%s1294_s8 + $0x40] sm:$0xff] }
  0x67   : > { %459 = vst [vmem:[%s1314_s11 + $0x68] sm:$0xff] %v427_v13  ;;  %v359_v41 = vld [vmem:[%s1294_s8 + $0x48] sm:$0xff]  ;;  %v360_v42 = vld [vmem:[%s1294_s8 + $0x50] sm:$0xff]  ;;  %v361_v43 = vld [vmem:[%s1294_s8 + $0x58] sm:$0xff] }
  0x68   : > { %460 = vst [vmem:[%s1314_s11 + $0x70] sm:$0xff] %v428_v14  ;;  %v362_v44 = vld [vmem:[%s1294_s8 + $0x60] sm:$0xff]  ;;  %v363_v45 = vld [vmem:[%s1294_s8 + $0x68] sm:$0xff]  ;;  %v364_v46 = vld [vmem:[%s1294_s8 + $0x70] sm:$0xff] }
  0x69   : > { %461 = vst [vmem:[%s1314_s11 + $0x78] sm:$0xff] %v429_v15  ;;  %v365_v47 = vld [vmem:[%s1294_s8 + $0x78] sm:$0xff]  ;;  %v366_v48 = vld [vmem:[%s1294_s8 + $0x80] sm:$0xff]  ;;  %v367_v49 = vld [vmem:[%s1294_s8 + $0x88] sm:$0xff] }
  0x6a   : > { %462 = vst [vmem:[%s1314_s11 + $0x80] sm:$0xff] %v430_v16  ;;  %v368_v50 = vld [vmem:[%s1294_s8 + $0x90] sm:$0xff]  ;;  %v369_v51 = vld [vmem:[%s1294_s8 + $0x98] sm:$0xff]  ;;  %v370_v52 = vld [vmem:[%s1294_s8 + $0xa0] sm:$0xff] }
  0x6b   : > { %463 = vst [vmem:[%s1314_s11 + $0x88] sm:$0xff] %v431_v17  ;;  %v371_v53 = vld [vmem:[%s1294_s8 + $0xa8] sm:$0xff]  ;;  %v372_v54 = vld [vmem:[%s1294_s8 + $0xb0] sm:$0xff]  ;;  %v373_v55 = vld [vmem:[%s1294_s8 + $0xb8] sm:$0xff] }
  0x6c   : > { %464 = vst [vmem:[%s1314_s11 + $0x90] sm:$0xff] %v432_v18  ;;  %v374_v56 = vld [vmem:[%s1294_s8 + $0xc0] sm:$0xff]  ;;  %v375_v57 = vld [vmem:[%s1294_s8 + $0xc8] sm:$0xff]  ;;  %v376_v58 = vld [vmem:[%s1294_s8 + $0xd0] sm:$0xff] }
  0x6d   : > { %465 = vst [vmem:[%s1314_s11 + $0x98] sm:$0xff] %v433_v19  ;;  %v377_v59 = vld [vmem:[%s1294_s8 + $0xd8] sm:$0xff]  ;;  %v378_v60 = vld [vmem:[%s1294_s8 + $0xe0] sm:$0xff]  ;;  %v379_v61 = vld [vmem:[%s1294_s8 + $0xe8] sm:$0xff] }
  0x6e   : > { %466 = vst [vmem:[%s1314_s11 + $0xa0] sm:$0xff] %v434_v20  ;;  %v380_v62 = vld [vmem:[%s1294_s8 + $0xf0] sm:$0xff]  ;;  %v381_v63 = vld [vmem:[%s1294_s8 + $0xf8] sm:$0xff]  ;;  %v478_v0 = vld [vmem:[%s1443_s1] sm:$0xff]  ;;  %s565_s8 = sshll.u32 %s1381_s28, 4  ;;  %s1535_s8 = int_to_ptr.vmem [resolvable:$true] %s565_s8 }
  0x6f   : > { %467 = vst [vmem:[%s1314_s11 + $0xa8] sm:$0xff] %v435_v21  ;;  %v479_v1 = vld [vmem:[%s1443_s1 + $0x8] sm:$0xff]  ;;  %v480_v2 = vld [vmem:[%s1443_s1 + $0x10] sm:$0xff]  ;;  %v481_v3 = vld [vmem:[%s1443_s1 + $0x18] sm:$0xff] }
  0x70   : > { %468 = vst [vmem:[%s1314_s11 + $0xb0] sm:$0xff] %v436_v22  ;;  %v482_v4 = vld [vmem:[%s1443_s1 + $0x20] sm:$0xff]  ;;  %v483_v5 = vld [vmem:[%s1443_s1 + $0x28] sm:$0xff]  ;;  %v484_v6 = vld [vmem:[%s1443_s1 + $0x30] sm:$0xff] }
  0x71   : > { %469 = vst [vmem:[%s1314_s11 + $0xb8] sm:$0xff] %v437_v23  ;;  %v485_v7 = vld [vmem:[%s1443_s1 + $0x38] sm:$0xff]  ;;  %v486_v8 = vld [vmem:[%s1443_s1 + $0x40] sm:$0xff]  ;;  %v487_v9 = vld [vmem:[%s1443_s1 + $0x48] sm:$0xff] }
  0x72   : > { %470 = vst [vmem:[%s1314_s11 + $0xc0] sm:$0xff] %v438_v24  ;;  %v488_v10 = vld [vmem:[%s1443_s1 + $0x50] sm:$0xff]  ;;  %v489_v11 = vld [vmem:[%s1443_s1 + $0x58] sm:$0xff]  ;;  %v490_v12 = vld [vmem:[%s1443_s1 + $0x60] sm:$0xff] }
  0x73   : > { %471 = vst [vmem:[%s1314_s11 + $0xc8] sm:$0xff] %v439_v25  ;;  %v491_v13 = vld [vmem:[%s1443_s1 + $0x68] sm:$0xff]  ;;  %v492_v14 = vld [vmem:[%s1443_s1 + $0x70] sm:$0xff]  ;;  %v493_v15 = vld [vmem:[%s1443_s1 + $0x78] sm:$0xff] }
  0x74   : > { %472 = vst [vmem:[%s1314_s11 + $0xd0] sm:$0xff] %v440_v26  ;;  %v494_v16 = vld [vmem:[%s1443_s1 + $0x80] sm:$0xff]  ;;  %v495_v17 = vld [vmem:[%s1443_s1 + $0x88] sm:$0xff]  ;;  %v496_v18 = vld [vmem:[%s1443_s1 + $0x90] sm:$0xff] }
  0x75   : > { %473 = vst [vmem:[%s1314_s11 + $0xd8] sm:$0xff] %v441_v27  ;;  %v497_v19 = vld [vmem:[%s1443_s1 + $0x98] sm:$0xff]  ;;  %v498_v20 = vld [vmem:[%s1443_s1 + $0xa0] sm:$0xff]  ;;  %v499_v21 = vld [vmem:[%s1443_s1 + $0xa8] sm:$0xff] }
  0x76   : > { %474 = vst [vmem:[%s1314_s11 + $0xe0] sm:$0xff] %v442_v28  ;;  %v500_v22 = vld [vmem:[%s1443_s1 + $0xb0] sm:$0xff]  ;;  %v501_v23 = vld [vmem:[%s1443_s1 + $0xb8] sm:$0xff]  ;;  %v502_v24 = vld [vmem:[%s1443_s1 + $0xc0] sm:$0xff] }
  0x77   : > { %475 = vst [vmem:[%s1314_s11 + $0xe8] sm:$0xff] %v443_v29  ;;  %v503_v25 = vld [vmem:[%s1443_s1 + $0xc8] sm:$0xff]  ;;  %v504_v26 = vld [vmem:[%s1443_s1 + $0xd0] sm:$0xff]  ;;  %v505_v27 = vld [vmem:[%s1443_s1 + $0xd8] sm:$0xff] }
  0x78   : > { %476 = vst [vmem:[%s1314_s11 + $0xf0] sm:$0xff] %v444_v30  ;;  %v506_v28 = vld [vmem:[%s1443_s1 + $0xe0] sm:$0xff]  ;;  %v507_v29 = vld [vmem:[%s1443_s1 + $0xe8] sm:$0xff]  ;;  %v508_v30 = vld [vmem:[%s1443_s1 + $0xf0] sm:$0xff] }
  0x79   : > { %477 = vst [vmem:[%s1314_s11 + $0xf8] sm:$0xff] %v445_v31  ;;  %v509_v31 = vld [vmem:[%s1443_s1 + $0xf8] sm:$0xff]  ;;  %s599_s11 = sshll.u32 %s1451_s14, 4  ;;  %s993_s1 = scalar_lea.hbm %s992_s16, 256  ;;  %s1540_s11 = int_to_ptr.vmem [resolvable:$true] %s599_s11 }
  0x7a   : > { %382 = vst [vmem:[%s1381_s28] sm:$0xff] %v350_v32  ;;  %p994_p6 = scmp.ne.s32.totalorder %s992_s16, %s993_s1  ;;  %p999_p8 = scmp.lt.s32.totalorder %s997_s24, %s993_s1 }
  0x7b   : > { %383 = vst [vmem:[%s1381_s28 + $0x8] sm:$0xff] %v351_v33 }
  0x7c   : > { %384 = vst [vmem:[%s1381_s28 + $0x10] sm:$0xff] %v352_v34  ;;  %p995_p12 = pnand %p994_p6, %p1190_p10  ;;  %p1000_p9 = por %p999_p8, %p998_p0 }
  0x7d   : > { %385 = vst [vmem:[%s1381_s28 + $0x18] sm:$0xff] %v353_v35 }
  0x7e   : > { %386 = vst [vmem:[%s1381_s28 + $0x20] sm:$0xff] %v354_v36  ;;  %p996_p1 = pneg %p995_p12 }
  0x7f   : > { %387 = vst [vmem:[%s1381_s28 + $0x28] sm:$0xff] %v355_v37 }
  0x80   : > { %388 = vst [vmem:[%s1381_s28 + $0x30] sm:$0xff] %v356_v38  ;;  %p1001_p2 = pnand %p1000_p9, %p996_p1 }
  0x81   : > { %389 = vst [vmem:[%s1381_s28 + $0x38] sm:$0xff] %v357_v39 }
  0x82   : > { %390 = vst [vmem:[%s1381_s28 + $0x40] sm:$0xff] %v358_v40 }
  0x83   : > { %391 = vst [vmem:[%s1381_s28 + $0x48] sm:$0xff] %v359_v41 }
  0x84   : > { %392 = vst [vmem:[%s1381_s28 + $0x50] sm:$0xff] %v360_v42 }
  0x85   : > { %393 = vst [vmem:[%s1381_s28 + $0x58] sm:$0xff] %v361_v43 }
  0x86   : > { %394 = vst [vmem:[%s1381_s28 + $0x60] sm:$0xff] %v362_v44 }
  0x87   : > { %395 = vst [vmem:[%s1381_s28 + $0x68] sm:$0xff] %v363_v45 }
  0x88   : > { %396 = vst [vmem:[%s1381_s28 + $0x70] sm:$0xff] %v364_v46 }
  0x89   : > { %397 = vst [vmem:[%s1381_s28 + $0x78] sm:$0xff] %v365_v47 }
  0x8a   : > { %398 = vst [vmem:[%s1381_s28 + $0x80] sm:$0xff] %v366_v48 }
  0x8b   : > { %399 = vst [vmem:[%s1381_s28 + $0x88] sm:$0xff] %v367_v49 }
  0x8c   : > { %400 = vst [vmem:[%s1381_s28 + $0x90] sm:$0xff] %v368_v50 }
  0x8d   : > { %401 = vst [vmem:[%s1381_s28 + $0x98] sm:$0xff] %v369_v51 }
  0x8e   : > { %402 = vst [vmem:[%s1381_s28 + $0xa0] sm:$0xff] %v370_v52 }
  0x8f   : > { %403 = vst [vmem:[%s1381_s28 + $0xa8] sm:$0xff] %v371_v53 }
  0x90   : > { %404 = vst [vmem:[%s1381_s28 + $0xb0] sm:$0xff] %v372_v54 }
  0x91   : > { %405 = vst [vmem:[%s1381_s28 + $0xb8] sm:$0xff] %v373_v55 }
  0x92   : > { %406 = vst [vmem:[%s1381_s28 + $0xc0] sm:$0xff] %v374_v56 }
  0x93   : > { %407 = vst [vmem:[%s1381_s28 + $0xc8] sm:$0xff] %v375_v57 }
  0x94   : > { %408 = vst [vmem:[%s1381_s28 + $0xd0] sm:$0xff] %v376_v58 }
  0x95   : > { %409 = vst [vmem:[%s1381_s28 + $0xd8] sm:$0xff] %v377_v59 }
  0x96   : > { %410 = vst [vmem:[%s1381_s28 + $0xe0] sm:$0xff] %v378_v60 }
  0x97   : > { %411 = vst [vmem:[%s1381_s28 + $0xe8] sm:$0xff] %v379_v61 }
  0x98   : > { %412 = vst [vmem:[%s1381_s28 + $0xf0] sm:$0xff] %v380_v62 }
  0x99   : > { %413 = vst [vmem:[%s1381_s28 + $0xf8] sm:$0xff] %v381_v63  ;;  %s1544_s28 = scalar_lea.sflag [#allocation10], %s282_s6 }
  0x9a   : > { %510 = vst [vmem:[%s1451_s14] sm:$0xff] %v478_v0 }
  0x9b   : > { %511 = vst [vmem:[%s1451_s14 + $0x8] sm:$0xff] %v479_v1 }
  0x9c   : > { %512 = vst [vmem:[%s1451_s14 + $0x10] sm:$0xff] %v480_v2 }
  0x9d   : > { %513 = vst [vmem:[%s1451_s14 + $0x18] sm:$0xff] %v481_v3 }
  0x9e   : > { %514 = vst [vmem:[%s1451_s14 + $0x20] sm:$0xff] %v482_v4 }
  0x9f   : > { %515 = vst [vmem:[%s1451_s14 + $0x28] sm:$0xff] %v483_v5 }
  0xa0   : > { %516 = vst [vmem:[%s1451_s14 + $0x30] sm:$0xff] %v484_v6 }
  0xa1   : > { %517 = vst [vmem:[%s1451_s14 + $0x38] sm:$0xff] %v485_v7 }
  0xa2   : > { %518 = vst [vmem:[%s1451_s14 + $0x40] sm:$0xff] %v486_v8 }
  0xa3   : > { %519 = vst [vmem:[%s1451_s14 + $0x48] sm:$0xff] %v487_v9 }
  0xa4   : > { %520 = vst [vmem:[%s1451_s14 + $0x50] sm:$0xff] %v488_v10 }
  0xa5   : > { %521 = vst [vmem:[%s1451_s14 + $0x58] sm:$0xff] %v489_v11 }
  0xa6   : > { %522 = vst [vmem:[%s1451_s14 + $0x60] sm:$0xff] %v490_v12 }
  0xa7   : > { %523 = vst [vmem:[%s1451_s14 + $0x68] sm:$0xff] %v491_v13 }
  0xa8   : > { %524 = vst [vmem:[%s1451_s14 + $0x70] sm:$0xff] %v492_v14 }
  0xa9   : > { %525 = vst [vmem:[%s1451_s14 + $0x78] sm:$0xff] %v493_v15 }
  0xaa   : > { %526 = vst [vmem:[%s1451_s14 + $0x80] sm:$0xff] %v494_v16 }
  0xab   : > { %527 = vst [vmem:[%s1451_s14 + $0x88] sm:$0xff] %v495_v17 }
  0xac   : > { %528 = vst [vmem:[%s1451_s14 + $0x90] sm:$0xff] %v496_v18 }
  0xad   : > { %529 = vst [vmem:[%s1451_s14 + $0x98] sm:$0xff] %v497_v19 }
  0xae   : > { %530 = vst [vmem:[%s1451_s14 + $0xa0] sm:$0xff] %v498_v20 }
  0xaf   : > { %531 = vst [vmem:[%s1451_s14 + $0xa8] sm:$0xff] %v499_v21 }
  0xb0   : > { %532 = vst [vmem:[%s1451_s14 + $0xb0] sm:$0xff] %v500_v22 }
  0xb1   : > { %533 = vst [vmem:[%s1451_s14 + $0xb8] sm:$0xff] %v501_v23 }
  0xb2   : > { %534 = vst [vmem:[%s1451_s14 + $0xc0] sm:$0xff] %v502_v24 }
  0xb3   : > { %535 = vst [vmem:[%s1451_s14 + $0xc8] sm:$0xff] %v503_v25 }
  0xb4   : > { %536 = vst [vmem:[%s1451_s14 + $0xd0] sm:$0xff] %v504_v26 }
  0xb5   : > { %537 = vst [vmem:[%s1451_s14 + $0xd8] sm:$0xff] %v505_v27 }
  0xb6   : > { %538 = vst [vmem:[%s1451_s14 + $0xe0] sm:$0xff] %v506_v28 }
  0xb7   : > { %539 = vst [vmem:[%s1451_s14 + $0xe8] sm:$0xff] %v507_v29 }
  0xb8   : > { %540 = vst [vmem:[%s1451_s14 + $0xf0] sm:$0xff] %v508_v30 }
  0xb9   : > { %541 = vst [vmem:[%s1451_s14 + $0xf8] sm:$0xff] %v509_v31 }
  0xba   : > { %1004 = shalt.err (!%p1001_p2)
}
  0xbb   : > { %s1111_s22 = smov 128   ;;  %s1112_s6 = smov 8  }
  0xbc   : > { %824 = dma.vmem_to_hbm [thread:$0]  (%p1190_p10), %s1518_s15, 4096, %s585_s7, %s1544_s28, %s1111_s22, %s1111_s22, %s1112_s6  }
  0xbd   : > { %s543_s14 = scalar_lea.sflag [#allocation4], %s1287_s0  ;;  %s1019_s27 = sshra.s32 %s568_s9, 4  ;;  %s1020_s27 = int_to_ptr.hbm [resolvable:$true] %s1019_s27 }
  0xbe   : > { %s1021_s12 = scalar_lea.hbm %s1020_s27, 256  ;;  %s1025_s16 = scalar_lea.hbm %s1621_s3, 1024 }
  0xbf   : > { %p1022_p3 = scmp.ne.s32.totalorder %s1020_s27, %s1021_s12  ;;  %p1026_p5 = scmp.lt.s32.totalorder %s1020_s27, %s1621_s3 }
  0xc0   : > { %p1027_p7 = scmp.lt.s32.totalorder %s1025_s16, %s1021_s12 }
  0xc1   : > { %p1023_p4 = pnand %p1022_p3, %p1190_p10 }
  0xc2   : > { %p1028_p6 = por %p1027_p7, %p1026_p5 }
  0xc3   : > { %p1024_p13 = pneg %p1023_p4 }
  0xc5   : > { %p1029_p12 = pnand %p1028_p6, %p1024_p13 }
  0xc7   : > { %1032 = shalt.err (!%p1029_p12)
}
  0xc8   : > { %823 = dma.vmem_to_hbm [thread:$0]  (%p1190_p10), %s1535_s8, 4096, %s568_s9, %s543_s14, %s1111_s22, %s1111_s22, %s1112_s6  }
  0xc9   : > { %s1047_s0 = sshra.s32 %s602_s17, 4  ;;  %s1053_s24 = scalar_lea.hbm %s1623_s5, 1024  ;;  %s1048_s0 = int_to_ptr.hbm [resolvable:$true] %s1047_s0 }
  0xca   : > { %s1049_s15 = scalar_lea.hbm %s1048_s0, 256  ;;  %p1054_p9 = scmp.lt.s32.totalorder %s1048_s0, %s1623_s5 }
  0xcb   : > { %p1050_p1 = scmp.ne.s32.totalorder %s1048_s0, %s1049_s15  ;;  %p1055_p2 = scmp.lt.s32.totalorder %s1053_s24, %s1049_s15 }
  0xcd   : > { %p1051_p0 = pnand %p1050_p1, %p1190_p10  ;;  %p1056_p3 = por %p1055_p2, %p1054_p9 }
  0xcf   : > { %p1052_p8 = pneg %p1051_p0 }
  0xd1   : > { %p1057_p4 = pnand %p1056_p3, %p1052_p8 }
  0xd3   : > { %1060 = shalt.err (!%p1057_p4)
}
  0xd4   : > { %825 = dma.vmem_to_hbm [thread:$0]  (%p1190_p10), %s1540_s11, 4096, %s602_s17, %s1544_s28, %s1111_s22, %s1111_s22, %s1112_s6  }
  0xd5 PF: > { %p850_p13 = scmp.ge.s32.totalorder %s1107_s21, 2  ;;  %s616_s8 = sand.u32 1, %s1095_s18  }
  0xd6   : > { %s617_s9 = scalar_lea.sflag [#allocation4], %s616_s8 }
  0xd7   : > { %p840_p5 = pnand %p850_p13, %p1194_p11 }
  0xd9   : > { %p841_p7 = pneg %p840_p5 }
  0xdb   : > { %1086 = dma.done.wait (%p841_p7), %s617_s9, 4096  }
  0xdc   : > { %1088 = vsyncadd (%p841_p7), %s617_s9, 4294963200  ;;  %s1645_s29 = sadd.s32 4294967294, %s1107_s21  }
  0xdd   : > { %s626_s14 = sand.u32 1, %s1645_s29  }
  0xde   : > { %s627_s27 = scalar_lea.sflag [#allocation10], %s626_s14 }
  0xdf   : > { %1090 = dma.done.wait (%p841_p7), %s627_s27, 8192  }
  0xe0   : > { %1092 = vsyncadd (%p841_p7), %s627_s27, 4294959104  ;;  %s1646_s21 = sld [smem:[#allocation17_spill]]  ;;  %s1649_s18 = smov %s1099_s19 }
  0xe1   : > { %s1647_s17 = sld [smem:[#allocation16_spill]] }
  0xe2   : > { %s1648_s20 = sld [smem:[#allocation18_spill]] }
  0xe6   : > { %p25_p10 = scmp.ge.s32.totalorder %s1646_s21, 6  }
  0xe7   : > { %s1650_s19 = smov %s1647_s17 }
  0xe8   :  { %27 = sbr.rel (!%p25_p10) target bundleno = 12 (0xc), region = 133 }
  0xed   :  { %643 = vsyncpa [#allocation3], 1 }
  0xee   :  { %645 = vsyncpa [#allocation3 + $0x1], 1 }
  0xef   :  { %646 = vsyncpa [#allocation6], 1 }
  0xf0   :  { %648 = vsyncpa [#allocation6 + $0x1], 1 }
  0xf1   :  { %649 = vsyncpa [#allocation4], 1 }
  0xf2   :  { %651 = vsyncpa [#allocation4 + $0x1], 1 }
  0xf3   :  { %652 = vsyncpa [#allocation10], 1 }
  0xf4   :  { %654 = vsyncpa [#allocation10 + $0x1], 1 }

</bundles_post_ra>
